<compile_context>
chip_gen: v6e
topology: v6e:2x2x1
jax: 0.10.0
libtpu: 0.0.40
codegen_flags: <defaults>
</compile_context>

<pallas_src>
import functools

import jax
import jax.numpy as jnp
from jax.experimental import pallas as pl
from jax.experimental.pallas import tpu as pltpu


_MASK_FILL = -1.0e9  # matches score.masked_fill_(mask, -1e9) in the PyTorch module


def _sdpa_kernel(*refs, scale, has_mask, return_attn, scale_in_q):
    # Input refs: q (1,TQ,D), k (1,Lk,D), v (1,Lk,D), [mask (1,TQ,Lk) int32]
    # Output refs: ctx (1,TQ,D), [attn (1,TQ,Lk)]
    if has_mask:
        q_ref, k_ref, v_ref, mask_ref = refs[:4]
        out_refs = refs[4:]
    else:
        q_ref, k_ref, v_ref = refs[:3]
        mask_ref = None
        out_refs = refs[3:]
    if return_attn:
        ctx_ref, attn_ref = out_refs
    else:
        (ctx_ref,) = out_refs
        attn_ref = None

    q = q_ref[0]                                       # (TQ, D)
    k = k_ref[0]                                       # (Lk, D)
    v = v_ref[0]                                       # (Lk, D)

    if scale_in_q:
        # f32 inputs: fold 1/sqrt(D) into q (TQ*D muls instead of TQ*Lk).
        q = q * jnp.asarray(scale, q.dtype)

    # score = q @ k^T, contracting the last dims directly so k is consumed in
    # its stored layout (no XLU transpose); MXU accumulates in f32.
    score = jax.lax.dot_general(
        q, k,
        dimension_numbers=(((1,), (1,)), ((), ())),
        preferred_element_type=jnp.float32,
    )                                                  # (TQ, Lk) f32
    if not scale_in_q:
        # Low-precision inputs: scale the f32 score instead of rounding a
        # scaled q before the matmul (bit-closer to the f32 reference).
        score = score * jnp.float32(scale)

    if mask_ref is not None:
        score = jnp.where(mask_ref[0] != 0, jnp.float32(_MASK_FILL), score)

    # Numerically-stable softmax along the key axis; exact division (the
    # approximate EUP reciprocal bought nothing on a (TQ,1) denominator and
    # perturbed every returned attention probability).
    score_max = jnp.max(score, axis=-1, keepdims=True)
    e = jnp.exp(score - score_max)
    attn = e / jnp.sum(e, axis=-1, keepdims=True)      # (TQ, Lk) f32

    # Single cast of the largest intermediate: reuse it for the attn@V matmul
    # and (when dtypes agree, the normal case) for the attn store.
    attn_v = attn.astype(v.dtype)
    ctx = jnp.dot(attn_v, v, preferred_element_type=jnp.float32)

    ctx_ref[0] = ctx.astype(ctx_ref.dtype)
    if attn_ref is not None:
        if attn_ref.dtype == v.dtype:
            attn_ref[0] = attn_v
        else:
            attn_ref[0] = attn.astype(attn_ref.dtype)


def _vmem_capacity_bytes():
    """Physical VMEM per TensorCore, with a conservative (v7x) fallback."""
    try:
        info = pltpu.get_tpu_info()
        for name in ("vmem_capacity_bytes", "vmem_size_bytes", "vmem_bytes"):
            cap = getattr(info, name, None)
            if cap:
                return int(cap)
    except Exception:
        pass
    return 64 * 1024 * 1024


def scaled_dot_product_attention(query, key, value, mask=None, *,
                                 tq=None, return_attn=True):
    """query: (B, Lq, D); key/value: (B, Lk, D); mask: optional (B, Lq, Lk) bool.

    Returns (context, attn) when return_attn=True (module semantics), else
    just context (skips the dominant attn HBM writeback)."""
    B, Lq, D = query.shape
    Bk, Lk, Dk = key.shape
    assert (Bk, Dk) == (B, D) and value.shape == key.shape
    has_mask = mask is not None
    if has_mask:
        assert mask.shape == (B, Lq, Lk)
        # int32 keeps the mask block layout simple/portable on TPU.
        mask = mask.astype(jnp.int32)

    scale = 1.0 / float(D) ** 0.5
    out_dtype = query.dtype
    itemsize = jnp.dtype(out_dtype).itemsize
    scale_in_q = jnp.dtype(query.dtype) == jnp.float32

    # Generation-aware VMEM budget: leave headroom for compiler scratch
    # (~48 MiB on 64 MiB parts, ~100 MiB on 128 MiB parts).
    cap = _vmem_capacity_bytes()
    budget = max(min(int(0.78 * cap), cap - (16 << 20)), 32 << 20)

    # Default q-tile: whole Lq for short sequences, otherwise 256 (512 when
    # the VMEM budget allows it, i.e. v5e/v6e-class parts).
    if tq is None:
        big = 512 if budget >= (96 << 20) else 256
        tq = Lq if Lq <= big else big
    tq = max(1, min(tq, Lq))

    def working_set(tq_, kv_bufs):
        blk = itemsize * (2 * tq_ * D                 # q blocks (double-buffered)
                          + kv_bufs * 2 * Lk * D      # k and v blocks
                          + 2 * tq_ * D)              # ctx out blocks
        if return_attn:
            blk += itemsize * 2 * tq_ * Lk            # attn out blocks
        if has_mask:
            blk += 4 * 2 * tq_ * Lk                   # int32 mask blocks
        interm = 4 * (3 * tq_ * Lk + tq_ * D)         # f32 score/exp/attn + ctx
        return blk + interm

    # Fit the working set: first single-buffer K/V (their block index only
    # changes with b, so the second buffer is dead weight), then shrink tq.
    kv_buffers = 2
    if working_set(tq, kv_buffers) > budget:
        kv_buffers = 1
    tq_floor = max(8, min(128, Lq))
    while working_set(tq, kv_buffers) > budget and tq > tq_floor:
        tq = max(tq_floor, ((tq // 2) + 7) // 8 * 8)
    # TODO(synk): for very long Lk (~8-16K on 64 MiB-VMEM parts) a flash-style
    # Lk tiling (online softmax over an "arbitrary" Lk grid axis) is needed;
    # here we only shrink tq / single-buffer K/V.

    n_q = pl.cdiv(Lq, tq)  # ragged Lq: boundary q block is masked on write

    kv_kwargs = {}
    if kv_buffers == 1:
        kv_kwargs = dict(pipeline_mode=pl.Buffered(1))

    in_specs = [
        pl.BlockSpec((1, tq, D), lambda b, qi: (b, qi, 0)),
        pl.BlockSpec((1, Lk, D), lambda b, qi: (b, 0, 0), **kv_kwargs),
        pl.BlockSpec((1, Lk, D), lambda b, qi: (b, 0, 0), **kv_kwargs),
    ]
    inputs = [query, key, value]
    if has_mask:
        in_specs.append(pl.BlockSpec((1, tq, Lk), lambda b, qi: (b, qi, 0)))
        inputs.append(mask)

    out_shape = [jax.ShapeDtypeStruct((B, Lq, D), out_dtype)]
    out_specs = [pl.BlockSpec((1, tq, D), lambda b, qi: (b, qi, 0))]
    if return_attn:
        out_shape.append(jax.ShapeDtypeStruct((B, Lq, Lk), out_dtype))
        out_specs.append(pl.BlockSpec((1, tq, Lk), lambda b, qi: (b, qi, 0)))

    bytes_accessed = itemsize * (2 * B * Lq * D + 2 * B * Lk * D)
    if return_attn:
        bytes_accessed += itemsize * B * Lq * Lk      # dominant stream
    if has_mask:
        bytes_accessed += 4 * B * Lq * Lk
    cost = pl.CostEstimate(
        flops=4 * B * Lq * Lk * D,                    # QK^T + attn@V
        transcendentals=B * Lq * Lk,                  # exp
        bytes_accessed=bytes_accessed,
    )

    vmem_limit = max(min(int(1.5 * working_set(tq, kv_buffers)), budget),
                     min(32 << 20, budget))

    kernel = functools.partial(
        _sdpa_kernel, scale=scale, has_mask=has_mask,
        return_attn=return_attn, scale_in_q=scale_in_q)

    outs = pl.pallas_call(
        kernel,
        out_shape=tuple(out_shape),
        grid_spec=pltpu.PrefetchScalarGridSpec(
            num_scalar_prefetch=0,
            grid=(B, n_q),                            # B outer: megacore shards on batch
            in_specs=in_specs,
            out_specs=out_specs,
        ),
        compiler_params=pltpu.CompilerParams(
            dimension_semantics=("parallel", "parallel"),
            vmem_limit_bytes=vmem_limit,
        ),
        cost_estimate=cost,
    )(*inputs)

    if return_attn:
        context, attn = outs
        return context, attn
    (context,) = outs
    return context


def _reference(query, key, value, mask=None):
    """Pure-JAX reference mirroring the PyTorch forward."""
    D = query.shape[-1]
    score = jnp.einsum("bqd,bkd->bqk", query.astype(jnp.float32),
                       key.astype(jnp.float32)) / jnp.sqrt(jnp.float32(D))
    if mask is not None:
        score = jnp.where(mask, jnp.float32(_MASK_FILL), score)
    attn = jax.nn.softmax(score, axis=-1)
    context = jnp.einsum("bqk,bkd->bqd", attn, value.astype(jnp.float32))
    return context.astype(query.dtype), attn.astype(query.dtype)


if __name__ == "__main__":
    B, Lq, Lk, D = 2, 12, 8, 32

    key0 = jax.random.PRNGKey(0)
    kq, kk, kv, km = jax.random.split(key0, 4)
    query = jax.random.normal(kq, (B, Lq, D), dtype=jnp.float32)
    key_t = jax.random.normal(kk, (B, Lk, D), dtype=jnp.float32)
    value = jax.random.normal(kv, (B, Lk, D), dtype=jnp.float32)

    # tq=8 exercises the q-tiled grid AND the ragged boundary block (Lq=12).
    context, attn = scaled_dot_product_attention(query, key_t, value, tq=8)
    jax.block_until_ready((context, attn))

    ctx_ref, attn_ref = _reference(query, key_t, value)
    assert context.shape == (B, Lq, D) and attn.shape == (B, Lq, Lk)
    # Exact softmax division -> f32 tolerance tightens to ~1e-5.
    assert jnp.allclose(context, ctx_ref, atol=1e-5, rtol=1e-5), "context mismatch"
    assert jnp.allclose(attn, attn_ref, atol=1e-5, rtol=1e-5), "attn mismatch"

    # Optional mask path (masked_fill_ with -1e9 before the softmax).
    mask = jax.random.bernoulli(km, 0.25, (B, Lq, Lk))
    ctx_m, attn_m = scaled_dot_product_attention(query, key_t, value, mask, tq=8)
    jax.block_until_ready((ctx_m, attn_m))
    cm_ref, am_ref = _reference(query, key_t, value, mask)
    assert jnp.allclose(ctx_m, cm_ref, atol=1e-5, rtol=1e-5), "masked context mismatch"
    assert jnp.allclose(attn_m, am_ref, atol=1e-5, rtol=1e-5), "masked attn mismatch"

    # Context-only fast path (drops the dominant attn HBM writeback).
    ctx_only = scaled_dot_product_attention(query, key_t, value, return_attn=False)
    jax.block_until_ready(ctx_only)
    assert jnp.allclose(ctx_only, ctx_ref, atol=1e-5, rtol=1e-5), "ctx-only mismatch"

    print("KERNEL_OK")
</pallas_src>

<mosaic_0001>
module attributes {stable_mosaic.version = 11 : i64} {
  func.func @_sdpa_kernel(%arg0: i32, %arg1: i32, %arg2: memref<1x8x32xf32, #tpu.memory_space<vmem>>, %arg3: memref<1x8x32xf32, #tpu.memory_space<vmem>>, %arg4: memref<1x8x32xf32, #tpu.memory_space<vmem>>, %arg5: memref<1x8x32xf32, #tpu.memory_space<vmem>>, %arg6: memref<1x8x8xf32, #tpu.memory_space<vmem>>) attributes {dimension_semantics = [#tpu.dimension_semantics<parallel>, #tpu.dimension_semantics<parallel>], iteration_bounds = array<i64: 2, 2>, scalar_prefetch = 0 : i64, scratch_operands = 0 : i64, tpu.core_type = #tpu.core_type<tc>, window_params = [{transform_indices = @transform_0, window_bounds = array<i64: 1, 8, 32>}, {transform_indices = @transform_1, window_bounds = array<i64: 1, 8, 32>}, {transform_indices = @transform_2, window_bounds = array<i64: 1, 8, 32>}, {transform_indices = @transform_3, window_bounds = array<i64: 1, 8, 32>}, {transform_indices = @transform_4, window_bounds = array<i64: 1, 8, 8>}]} {
    %c0 = arith.constant 0 : index
    %c0_0 = arith.constant 0 : index
    %c0_1 = arith.constant 0 : index
    %0 = vector.load %arg2[%c0, %c0_0, %c0_1] : memref<1x8x32xf32, #tpu.memory_space<vmem>>, vector<1x8x32xf32>
    %1 = vector.shape_cast %0 : vector<1x8x32xf32> to vector<8x32xf32>
    %c0_2 = arith.constant 0 : index
    %c0_3 = arith.constant 0 : index
    %c0_4 = arith.constant 0 : index
    %2 = vector.load %arg3[%c0_2, %c0_3, %c0_4] : memref<1x8x32xf32, #tpu.memory_space<vmem>>, vector<1x8x32xf32>
    %3 = vector.shape_cast %2 : vector<1x8x32xf32> to vector<8x32xf32>
    %c0_5 = arith.constant 0 : index
    %c0_6 = arith.constant 0 : index
    %c0_7 = arith.constant 0 : index
    %4 = vector.load %arg4[%c0_5, %c0_6, %c0_7] : memref<1x8x32xf32, #tpu.memory_space<vmem>>, vector<1x8x32xf32>
    %5 = vector.shape_cast %4 : vector<1x8x32xf32> to vector<8x32xf32>
    %cst = arith.constant 0.176776692 : f32
    %6 = vector.broadcast %cst : f32 to vector<8x32xf32>
    %7 = arith.mulf %1, %6 : vector<8x32xf32>
    %cst_8 = arith.constant dense<0.000000e+00> : vector<8x8xf32>
    %8 = tpu.matmul %7, %3, %cst_8 {dimension_numbers = #tpu.dot_dimension_numbers<[1], [1], [0], [0], [0, 0, 1, 0], [], []>} : vector<8x32xf32>, vector<8x32xf32>, vector<8x8xf32> -> vector<8x8xf32>
    %cst_9 = arith.constant dense<0xFF800000> : vector<8xf32>
    %9 = vector.multi_reduction <maximumf>, %8, %cst_9 [1] : vector<8x8xf32> to vector<8xf32>
    %10 = vector.shape_cast %9 : vector<8xf32> to vector<8x1xf32>
    %11 = vector.broadcast %10 : vector<8x1xf32> to vector<8x8xf32>
    %12 = arith.subf %8, %11 : vector<8x8xf32>
    %13 = math.exp %12 : vector<8x8xf32>
    %cst_10 = arith.constant dense<0.000000e+00> : vector<8xf32>
    %14 = vector.multi_reduction <add>, %13, %cst_10 [1] : vector<8x8xf32> to vector<8xf32>
    %15 = vector.shape_cast %14 : vector<8xf32> to vector<8x1xf32>
    %16 = vector.broadcast %15 : vector<8x1xf32> to vector<8x8xf32>
    %17 = arith.divf %13, %16 : vector<8x8xf32>
    %cst_11 = arith.constant dense<0.000000e+00> : vector<8x32xf32>
    %18 = tpu.matmul %17, %5, %cst_11 {dimension_numbers = #tpu.dot_dimension_numbers<[1], [0], [0], [1], [0, 0, 1, 1], [], []>} : vector<8x8xf32>, vector<8x32xf32>, vector<8x32xf32> -> vector<8x32xf32>
    %c0_12 = arith.constant 0 : index
    %c0_13 = arith.constant 0 : index
    %c0_14 = arith.constant 0 : index
    %19 = vector.load %arg5[%c0_12, %c0_13, %c0_14] : memref<1x8x32xf32, #tpu.memory_space<vmem>>, vector<1x8x32xf32>
    %20 = vector.shape_cast %19 : vector<1x8x32xf32> to vector<8x32xf32>
    %21 = vector.shape_cast %18 : vector<8x32xf32> to vector<1x8x32xf32>
    tpu.vector_store %arg5[%c0_12, %c0_13, %c0_14], %21 {strides = array<i32>} : memref<1x8x32xf32, #tpu.memory_space<vmem>>, vector<1x8x32xf32>,
    %c0_15 = arith.constant 0 : index
    %c0_16 = arith.constant 0 : index
    %c0_17 = arith.constant 0 : index
    %22 = vector.load %arg6[%c0_15, %c0_16, %c0_17] : memref<1x8x8xf32, #tpu.memory_space<vmem>>, vector<1x8x8xf32>
    %23 = vector.shape_cast %22 : vector<1x8x8xf32> to vector<8x8xf32>
    %24 = vector.shape_cast %17 : vector<8x8xf32> to vector<1x8x8xf32>
    tpu.vector_store %arg6[%c0_15, %c0_16, %c0_17], %24 {strides = array<i32>} : memref<1x8x8xf32, #tpu.memory_space<vmem>>, vector<1x8x8xf32>,
    return
  }
  func.func @transform_0(%arg0: i32, %arg1: i32) -> (i32, i32, i32) {
    %c0_i32 = arith.constant 0 : i32
    %c0_i32_0 = arith.constant 0 : i32
    return %arg0, %arg1, %c0_i32 : i32, i32, i32
  }
  func.func @transform_1(%arg0: i32, %arg1: i32) -> (i32, i32, i32) {
    %c0_i32 = arith.constant 0 : i32
    %c0_i32_0 = arith.constant 0 : i32
    %c0_i32_1 = arith.constant 0 : i32
    return %arg0, %c0_i32, %c0_i32_0 : i32, i32, i32
  }
  func.func @transform_2(%arg0: i32, %arg1: i32) -> (i32, i32, i32) {
    %c0_i32 = arith.constant 0 : i32
    %c0_i32_0 = arith.constant 0 : i32
    %c0_i32_1 = arith.constant 0 : i32
    return %arg0, %c0_i32, %c0_i32_0 : i32, i32, i32
  }
  func.func @transform_3(%arg0: i32, %arg1: i32) -> (i32, i32, i32) {
    %c0_i32 = arith.constant 0 : i32
    %c0_i32_0 = arith.constant 0 : i32
    return %arg0, %arg1, %c0_i32 : i32, i32, i32
  }
  func.func @transform_4(%arg0: i32, %arg1: i32) -> (i32, i32, i32) {
    %c0_i32 = arith.constant 0 : i32
    %c0_i32_0 = arith.constant 0 : i32
    return %arg0, %arg1, %c0_i32 : i32, i32, i32
  }
}

</mosaic_0001>

<bundles_post_ra>
// kernel: tpu_custom_call.1
= control target key start
LH: loop header
LB: loop body
LE: loop exit
PB: predicated region body
PF: predicated region fallthrough
CT: control target
= control target key end

     0   :  { %s754_s15 = smov 0   ;;  %s756_s16 = smov 0   ;;  %s830_s0 = inlined_call_operand.vmem [shape: f32[2,12,32], index: 0, kind: input, shape index: {}]   ;;  %s831_s1 = inlined_call_operand.vmem [shape: f32[2,8,32], index: 1, kind: input, shape index: {}]   ;;  %s832_s2 = inlined_call_operand.vmem [shape: f32[2,8,32], index: 2, kind: input, shape index: {}]   ;;  %s833_s3 = inlined_call_operand.vmem [shape: f32[2,12,32], index: 3, kind: output, shape index: {0}]   ;;  %s834_s4 = inlined_call_operand.vmem [shape: f32[2,12,8], index: 4, kind: output, shape index: {1}]  }
   0x1   :  { %s758_s17 = smov 0   ;;  %s760_s18 = smov 0  }
   0x2   :  { %s762_s19 = smov 0  }
   0x3 LB: > { %s24_s20 = sadd.s32 1, %s717_s17  ;;  %s27_s21 = sadd.s32 1, %s721_s18  ;;  %s725_s19 = sphi %s762_s19, %s15_s19   ;;  %s721_s18 = sphi %s760_s18, %s838_s18   ;;  %s717_s17 = sphi %s758_s17, %s837_s17   ;;  %s713_s16 = sphi %s756_s16, %s836_s16   ;;  %s709_s15 = sphi %s754_s15, %s835_s15  }
   0x4   : > { %p25_p0 = scmp.ge.s32.totalorder %s24_s20, 2  ;;  %p613_p1 = scmp.ge.s32.totalorder %s725_s19, 1 }
   0x5   : > { %p204_p2 = scmp.lt.s32.totalorder %s725_s19, 5 }
   0x6   : > { %s840_s20 = smov (%p25_p0, %s24_s20), 0  ;;  %s842_s21 = smov (!%p25_p0, %s27_s21), %s721_s18 }
   0x7   : > { %p205_p3 = pnand %p613_p1, %p204_p2  ;;  %p29_p4 = scmp.ge.s32.totalorder %s842_s21, 2 }
   0x8   : > { %p252_p5 = scmp.lt.s32.totalorder (!%p205_p3), %s713_s16, 1  ;;  %p254_p6 = scmp.lt.s32.totalorder (!%p205_p3), %s709_s15, 1 }
   0x9   : > { %s844_s21 = smov (%p29_p4, %s842_s21), 0  ;;  %208 = sbr.rel (%p205_p3) target bundleno = 722 (0x2d2), region = 32 }
   0xe   : > { %v727_v0 = vmov 0.0   ;;  %vm728_vm0 = vmmov 0   ;;  %s846_s16 = smov (!%p252_p5, %s713_s16), 1  ;;  %s848_s15 = smov (!%p254_p6, %s709_s15), 1  ;;  %vm288_vm1 = vcmask 261120   ;;  %vm365_vm2 = vcmask 64512  }
   0xf   : > { %631 = vmatprep.subr.mxu0 %v727_v0  ;;  %633 = vmatprep.mubr.msk.f32.mxu0 %vm728_vm0, %v727_v0  ;;  %s614_s22 = sshll.u32 %s846_s16, 1  ;;  %s616_s23 = sshll.u32 %s846_s16, 3 }
  0x10   : > { %636 = vmatprep.subr.mxu1 %v727_v0  ;;  %638 = vmatprep.mubr.msk.f32.mxu1 %vm728_vm0, %v727_v0  ;;  %s257_s24 = sadd.s32 %s614_s22, %s848_s15  ;;  %s263_s27 = scalar_lea.vmem %s831_s1, %s616_s23 }
  0x11   : > { %s791_s28 = sshll.u32 %s257_s24, 3  ;;  %v285_v1 = vld [vmem:[%s263_s27] sm:$0xff]  ;;  %s267_s8 = scalar_lea.vmem %s832_s2, %s616_s23 }
  0x12   : > { %632 = vmatpush3.xpose.msk.msra.mxu0 %vm288_vm1, %v285_v1  ;;  %s259_s5 = scalar_lea.vmem %s830_s0, %s791_s28  ;;  %v286_v12 = vld [vmem:[%s267_s8] sm:$0xff]  ;;  %s283_s11 = scalar_lea.vmem %s834_s4, %s791_s28 }
  0x13   : > { %v284_v2 = vld [vmem:[%s259_s5] sm:$0xff]  ;;  %637 = vmatpush3.msra.mxu1 %v286_v12  ;;  %s275_s14 = scalar_lea.vmem %s833_s3, %s791_s28 }
  0x14   : > { %v287_v3 = vmul.f32 0.17677669, %v284_v2 }
  0x16   : > { %634 = vmatmul.mubr.msk.f32.vlgmr.msra.gmra.mxu0 %vm288_vm1, %v287_v3 }
  0xd6   : > { %v361_v4 = vpop.f32.mrf.mxu0 }
  0xd7   : > { %v366_v5 = vsel %vm365_vm2, %v361_v4, -inf }
  0xd8   : > { %367 = vmax.xlane.f32.xlu0 %v366_v5  ;;  %v635_v6 = vpop.f32.mrf.mxu0 }
 0x161   : > { %v368_v7 = vpop.xlane.xlu0 %367 }
 0x162   : > { %v369_v8 = vsub.f32 %v361_v4, %v368_v7 }
 0x164   : > { %v370_v9 = vmul.f32 1.442695, %v369_v8 }
 0x166   : > { %683 = vpow2.f32 %v370_v9 }
 0x173   : > { %v684_v10 = vpop.eup %683 }
 0x174   : > { %v372_v11 = vsel %vm365_vm2, %v684_v10, 0.0 }
 0x175   : > { %373 = vadd.xlane.f32.xlu0 %v372_v11 }
 0x1fe   : > { %v374_v13 = vpop.xlane.xlu0 %373 }
 0x1ff   : > { %685 = vrcp.f32 %v374_v13 }
 0x20c   : > { %v686_v14 = vpop.eup %685 }
 0x20d   : > { %v376_v15 = vmul.f32 %v686_v14, %v684_v10 }
 0x20f   : > { %639 = vmatmul.mubr.msk.f32.vlgmr.msra.gmra.mxu1 %vm365_vm2, %v376_v15  ;;  %451 = vst.msk [vmem:[%s283_s11] sm:$0xff] %vm365_vm2, %v376_v15 }
 0x2cf   : > { %v446_v16 = vpop.f32.mrf.mxu1 }
 0x2d0   : > { %450 = vst.msk [vmem:[%s275_s14] sm:$0xff] %vm288_vm1, %v446_v16 }
 0x2d1   : > { %v640_v17 = vpop.f32.mrf.mxu1 }
 0x2d2 PF: > { %s15_s19 = sadd.s32 1, %s725_s19   ;;  %s835_s15 = smov %s717_s17 }
 0x2d3   : > { %p12_p7 = scmp.ge.s32.totalorder %s15_s19, 6   ;;  %s836_s16 = smov %s721_s18 }
 0x2d4   : > { %s837_s17 = smov %s840_s20  ;;  %s838_s18 = smov %s844_s21 }
 0x2d5   :  { %14 = sbr.rel (!%p12_p7) target bundleno = 3 (0x3), region = 80 }

</bundles_post_ra>
